<compile_context>
chip_gen: v5e
topology: v5e:2x2
jax: 0.10.0
libtpu: 0.0.40
codegen_flags: <defaults>
</compile_context>

<pallas_src>
import jax
import jax.numpy as jnp
from jax import lax
from jax.experimental import pallas as pl
from jax.experimental.pallas import tpu as pltpu

# ---- hyperparameters ---------------------------------------------------------
EMBEDDING_DIM = 16
H_DIM = 32
NUM_LAYERS = 1
DROPOUT = 0.0
PRED_LEN = 8
MLP_INPUT_DIM = 3          # [dx, dy, speed]
MULTI_CONDITIONAL_MODEL = False


# ---- Pallas kernel -----------------------------------------------------------
def decoder_kernel(x0_ref, speed_ref, c0_ref,
                   w0_ref, w_fold_ref,
                   b0_ref, b_fold_ref, v_spd_ref,
                   whp_ref, bhp_ref,
                   out_ref, h_stash):
    B, H = c0_ref.shape
    G = 4 * H
    T = speed_ref.shape[0]
    bf16, f32 = jnp.bfloat16, jnp.float32

    # Lane-index mask selecting the tanh (`g`) block of the [i|f|g|o] gate layout.
    lane = lax.broadcasted_iota(jnp.int32, (B, G), 1)
    g_mask = (lane >= 2 * H) & (lane < 3 * H)
    # tanh(x) = 2*sigmoid(2x) - 1  ->  ONE sigmoid pass over the whole gate vreg,
    # g-lanes pre-scaled by 2 and fixed up with a mul + sub on hoisted constants.
    g_pre = jnp.where(g_mask, jnp.float32(2.0), jnp.float32(1.0))   # also the post-scale
    g_off = jnp.where(g_mask, jnp.float32(1.0), jnp.float32(0.0))

    # Hoisted recurrent operands (loaded once, reused by the unrolled loop).
    w_fold = w_fold_ref[...]
    v_spd = v_spd_ref[...]
    b_fold = b_fold_ref[...]

    def lstm_cell(gates, c):
        s = jax.nn.sigmoid(gates * g_pre)       # single EUP pass for all four gates
        act = s * g_pre - g_off                 # g-lanes: 2*sigmoid(2x)-1 = tanh(x)
        i = act[:, 0 * H:1 * H]
        f = act[:, 1 * H:2 * H]
        g = act[:, 2 * H:3 * H]
        o = act[:, 3 * H:4 * H]
        c_new = f * c + i * g
        h_new = o * jnp.tanh(c_new)
        return h_new, c_new

    # ---- step 0: ONE fused MXU push  [last_pos_rel | h0] @ [W_pos_ih ; Whh] ----
    gates = (jnp.dot(x0_ref[...], w0_ref[...], preferred_element_type=f32)
             + speed_ref[0] * v_spd + b0_ref[...])
    h, c = lstm_cell(gates, c0_ref[...])
    h_stash[pl.ds(0, B), :] = h

    # ---- steps 1..T-1: ONE folded recurrent bf16 matmul per step (unrolled) ----
    for t in range(1, T):
        gates = (jnp.dot(h.astype(bf16), w_fold, preferred_element_type=f32)
                 + speed_ref[t] * v_spd + b_fold)
        h, c = lstm_cell(gates, c)
        h_stash[pl.ds(t * B, B), :] = h

    # ---- hidden2pos hoisted out of the recurrence: one stacked bf16 matmul -----
    out_ref[...] = (jnp.dot(h_stash[...].astype(bf16), whp_ref[...],
                            preferred_element_type=f32)
                    + bhp_ref[...])                                  # (T*B, 2), f32


# ---- wrapper -----------------------------------------------------------------
def decoder_forward(last_pos, last_pos_rel, pred_ped_speed, h0, c0, kparams,
                    *, b_blk=None):
    # `last_pos` only feeds `curr_pos`, which never reaches the returned
    # pred_traj_fake_rel -> dead w.r.t. the module output; not passed to the kernel.
    del last_pos
    batch = last_pos_rel.shape[0]
    T, H = PRED_LEN, H_DIM
    if b_blk is None:
        b_blk = batch
    assert batch % b_blk == 0 and (b_blk == batch or b_blk % 8 == 0)
    nb = batch // b_blk

    # Step-0 matmul fusion: one (B, H+2) operand = [last_pos_rel | h0]; bf16 MXU operand.
    x0 = jnp.concatenate([last_pos_rel, h0], axis=1).astype(jnp.bfloat16)

    grid_spec = pltpu.PrefetchScalarGridSpec(
        num_scalar_prefetch=0,
        grid=(nb,),
        in_specs=[
            pl.BlockSpec((b_blk, H + 2), lambda b: (b, 0)),        # x0
            pl.BlockSpec((T, b_blk, 1), lambda b: (0, b, 0)),      # speed
            pl.BlockSpec((b_blk, H), lambda b: (b, 0)),            # c0
            pl.BlockSpec((H + 2, 4 * H), lambda b: (0, 0)),        # w0 (fused step-0)
            pl.BlockSpec((H, 4 * H), lambda b: (0, 0)),            # w_fold
            pl.BlockSpec((1, 4 * H), lambda b: (0, 0)),            # b0
            pl.BlockSpec((1, 4 * H), lambda b: (0, 0)),            # b_fold
            pl.BlockSpec((1, 4 * H), lambda b: (0, 0)),            # v_spd
            pl.BlockSpec((H, 2), lambda b: (0, 0)),                # whp (bf16)
            pl.BlockSpec((1, 2), lambda b: (0, 0)),                # bhp
        ],
        out_specs=pl.BlockSpec((T * b_blk, 2), lambda b: (b, 0)),
        scratch_shapes=[pltpu.VMEM((T * b_blk, H), jnp.float32)],   # per-step h stash
    )

    out_flat = pl.pallas_call(
        decoder_kernel,
        out_shape=jax.ShapeDtypeStruct((nb * T * b_blk, 2), jnp.float32),
        grid_spec=grid_spec,
        # Batch grid axis is embarrassingly parallel -> megacore / 2nd v7x TC when nb > 1.
        # NOTE(v7x): when growing b_blk for production batches, budget for 64 MiB physical
        # VMEM and set vmem_limit_bytes explicitly instead of reusing a v6e-sized tile.
        compiler_params=pltpu.CompilerParams(
            dimension_semantics=("parallel",)),
    )(x0, pred_ped_speed, c0,
      kparams['w0'], kparams['w_fold'],
      kparams['b0'], kparams['b_fold'], kparams['v_spd'],
      kparams['whp'], kparams['bhp'])

    # Rows are (block-major, then time, then row-in-block); reassemble to (T, batch, 2).
    return (out_flat.reshape(nb, T, b_blk, 2)
            .transpose(1, 0, 2, 3)
            .reshape(T, batch, 2))


# ---- deterministic parameter init (same shapes as the nn.Module) -------------
def init_raw_params(key):
    E, H, D = EMBEDDING_DIM, H_DIM, MLP_INPUT_DIM
    ks = jax.random.split(key, 8)
    u = lambda k, shape, s: jax.random.uniform(k, shape, jnp.float32, -s, s)
    sD, sH = 1.0 / (D ** 0.5), 1.0 / (H ** 0.5)
    return dict(
        w_se=u(ks[0], (E, D), sD),       # spatial_embedding.weight
        b_se=u(ks[1], (E,), sD),         # spatial_embedding.bias
        w_ih=u(ks[2], (4 * H, E), sH),   # lstm.weight_ih_l0
        w_hh=u(ks[3], (4 * H, H), sH),   # lstm.weight_hh_l0
        b_ih=u(ks[4], (4 * H,), sH),     # lstm.bias_ih_l0
        b_hh=u(ks[5], (4 * H,), sH),     # lstm.bias_hh_l0
        w_hp=u(ks[6], (2, H), sH),       # hidden2pos.weight
        b_hp=u(ks[7], (2,), sH),         # hidden2pos.bias
    )


def fold_params(raw):
    """Algebraically fold hidden2pos -> spatial_embedding -> W_ih into the recurrence
    (all folding in f32; only the final MXU operands are cast to bf16)."""
    bf16 = jnp.bfloat16
    w_se, b_se = raw['w_se'], raw['b_se']
    wih_t = raw['w_ih'].T                       # (E, 4H)
    whh_t = raw['w_hh'].T                       # (H, 4H)
    blstm = (raw['b_ih'] + raw['b_hh'])[None]   # (1, 4H)
    whp_t = raw['w_hp'].T                       # (H, 2)
    bhp = raw['b_hp'][None]                     # (1, 2)

    wse_pos = w_se[:, :2].T                     # (2, E)  position columns of W_se^T
    wse_spd = w_se[:, 2:3].T                    # (1, E)  speed column of W_se^T

    w_pos_ih = wse_pos @ wih_t                  # (2, 4H)   rel-pos -> gates
    w_fold = whp_t @ w_pos_ih + whh_t           # (H, 4H)   folded recurrent weight
    v_spd = wse_spd @ wih_t                     # (1, 4H)   speed -> gates
    b0 = b_se[None] @ wih_t + blstm             # (1, 4H)   step-0 bias
    b_fold = bhp @ w_pos_ih + b0                # (1, 4H)   folded bias, steps >= 1
    w0 = jnp.concatenate([w_pos_ih, whh_t], 0)  # (H+2, 4H) fused step-0 weight

    return dict(
        w0=w0.astype(bf16),                     # bf16 MXU operands
        w_fold=w_fold.astype(bf16),
        whp=whp_t.astype(bf16),                 # bf16 epilogue matmul operand
        b0=b0, b_fold=b_fold, v_spd=v_spd,      # biases / speed vector stay f32
        bhp=bhp,
    )


# ---- pure-JAX reference (mirrors the PyTorch forward, train path) ------------
def decoder_reference(last_pos, last_pos_rel, speed, h0, c0, raw):
    H = H_DIM
    w_se, b_se = raw['w_se'], raw['b_se']
    wih_t, whh_t = raw['w_ih'].T, raw['w_hh'].T
    blstm = raw['b_ih'] + raw['b_hh']
    whp_t, bhp = raw['w_hp'].T, raw['b_hp']

    def spatial_embed(pos_speed):
        return pos_speed @ w_se.T + b_se

    x = spatial_embed(jnp.concatenate([last_pos_rel, speed[0]], axis=1))
    h, c, lp = h0, c0, last_pos
    outs = []
    for t in range(PRED_LEN):
        gates = x @ wih_t + h @ whh_t + blstm
        i = jax.nn.sigmoid(gates[:, :H])
        f = jax.nn.sigmoid(gates[:, H:2 * H])
        g = jnp.tanh(gates[:, 2 * H:3 * H])
        o = jax.nn.sigmoid(gates[:, 3 * H:4 * H])
        c = f * c + i * g
        h = o * jnp.tanh(c)
        rel = h @ whp_t + bhp
        lp = rel + lp
        outs.append(rel)
        spd = speed[min(t + 1, PRED_LEN - 1)]
        x = spatial_embed(jnp.concatenate([rel, spd], axis=1))
    return jnp.stack(outs, axis=0)


if __name__ == "__main__":
    key = jax.random.PRNGKey(0)
    kp, k1, k2, k3, k4, k5 = jax.random.split(key, 6)
    batch = 8

    raw = init_raw_params(kp)
    kparams = fold_params(raw)

    last_pos = jax.random.normal(k1, (batch, 2), jnp.float32)
    last_pos_rel = jax.random.normal(k2, (batch, 2), jnp.float32)
    pred_ped_speed = jax.random.uniform(k3, (PRED_LEN, batch, 1), jnp.float32)
    # state_tuple (h, c): single LSTM layer -> (batch, h_dim) each
    h0 = 0.1 * jax.random.normal(k4, (batch, H_DIM), jnp.float32)
    c0 = 0.1 * jax.random.normal(k5, (batch, H_DIM), jnp.float32)

    out = decoder_forward(last_pos, last_pos_rel, pred_ped_speed, h0, c0, kparams)
    out = jax.block_until_ready(out)

    ref = decoder_reference(last_pos, last_pos_rel, pred_ped_speed, h0, c0, raw)
    assert out.shape == (PRED_LEN, batch, 2)
    # bf16 MXU operands (folded recurrence + bf16 epilogue projection, per perf review)
    # relax the match vs. the fp32 reference; observed error is O(1e-3), tolerance 2e-2
    # kept for margin.
    err = float(jnp.max(jnp.abs(out - ref)))
    assert jnp.allclose(out, ref, atol=2e-2, rtol=2e-2), err
    print("KERNEL_OK")
</pallas_src>

<mosaic_0001>
module attributes {stable_mosaic.version = 11 : i64} {
  func.func @decoder_kernel(%arg0: i32, %arg1: memref<8x34xbf16, #tpu.memory_space<vmem>>, %arg2: memref<8x8x1xf32, #tpu.memory_space<vmem>>, %arg3: memref<8x32xf32, #tpu.memory_space<vmem>>, %arg4: memref<34x128xbf16, #tpu.memory_space<vmem>>, %arg5: memref<32x128xbf16, #tpu.memory_space<vmem>>, %arg6: memref<1x128xf32, #tpu.memory_space<vmem>>, %arg7: memref<1x128xf32, #tpu.memory_space<vmem>>, %arg8: memref<1x128xf32, #tpu.memory_space<vmem>>, %arg9: memref<32x2xbf16, #tpu.memory_space<vmem>>, %arg10: memref<1x2xf32, #tpu.memory_space<vmem>>, %arg11: memref<64x2xf32, #tpu.memory_space<vmem>>, %arg12: memref<64x32xf32, #tpu.memory_space<vmem>>) attributes {dimension_semantics = [#tpu.dimension_semantics<parallel>], iteration_bounds = array<i64: 1>, scalar_prefetch = 0 : i64, scratch_operands = 1 : i64, tpu.core_type = #tpu.core_type<tc>, window_params = [{transform_indices = @transform_0, window_bounds = array<i64: 8, 34>}, {transform_indices = @transform_1, window_bounds = array<i64: 8, 8, 1>}, {transform_indices = @transform_2, window_bounds = array<i64: 8, 32>}, {pipeline_mode = #tpu.pipeline_mode<synchronous>, transform_indices = @transform_3, window_bounds = array<i64: 34, 128>}, {pipeline_mode = #tpu.pipeline_mode<synchronous>, transform_indices = @transform_4, window_bounds = array<i64: 32, 128>}, {pipeline_mode = #tpu.pipeline_mode<synchronous>, transform_indices = @transform_5, window_bounds = array<i64: 1, 128>}, {pipeline_mode = #tpu.pipeline_mode<synchronous>, transform_indices = @transform_6, window_bounds = array<i64: 1, 128>}, {pipeline_mode = #tpu.pipeline_mode<synchronous>, transform_indices = @transform_7, window_bounds = array<i64: 1, 128>}, {pipeline_mode = #tpu.pipeline_mode<synchronous>, transform_indices = @transform_8, window_bounds = array<i64: 32, 2>}, {pipeline_mode = #tpu.pipeline_mode<synchronous>, transform_indices = @transform_9, window_bounds = array<i64: 1, 2>}, {transform_indices = @transform_10, window_bounds = array<i64: 64, 2>}]} {
    %0 = tpu.iota {dimensions = array<i32: 1>} : vector<8x128xi32>
    %c64_i32 = arith.constant 64 : i32
    %1 = vector.broadcast %c64_i32 : i32 to vector<8x128xi32>
    %2 = arith.cmpi sge, %0, %1 : vector<8x128xi32>
    %c96_i32 = arith.constant 96 : i32
    %3 = vector.broadcast %c96_i32 : i32 to vector<8x128xi32>
    %4 = arith.cmpi slt, %0, %3 : vector<8x128xi32>
    %5 = arith.andi %2, %4 : vector<8x128xi1>
    %cst = arith.constant 2.000000e+00 : f32
    %cst_0 = arith.constant 1.000000e+00 : f32
    %6 = vector.broadcast %cst : f32 to vector<8x128xf32>
    %7 = vector.broadcast %cst_0 : f32 to vector<8x128xf32>
    %8 = arith.select %5, %6, %7 : vector<8x128xi1>, vector<8x128xf32>
    %cst_1 = arith.constant 1.000000e+00 : f32
    %cst_2 = arith.constant 0.000000e+00 : f32
    %9 = vector.broadcast %cst_1 : f32 to vector<8x128xf32>
    %10 = vector.broadcast %cst_2 : f32 to vector<8x128xf32>
    %11 = arith.select %5, %9, %10 : vector<8x128xi1>, vector<8x128xf32>
    %c0 = arith.constant 0 : index
    %c0_3 = arith.constant 0 : index
    %12 = vector.load %arg5[%c0, %c0_3] : memref<32x128xbf16, #tpu.memory_space<vmem>>, vector<32x128xbf16>
    %c0_4 = arith.constant 0 : index
    %c0_5 = arith.constant 0 : index
    %13 = vector.load %arg8[%c0_4, %c0_5] : memref<1x128xf32, #tpu.memory_space<vmem>>, vector<1x128xf32>
    %c0_6 = arith.constant 0 : index
    %c0_7 = arith.constant 0 : index
    %14 = vector.load %arg7[%c0_6, %c0_7] : memref<1x128xf32, #tpu.memory_space<vmem>>, vector<1x128xf32>
    %c0_8 = arith.constant 0 : index
    %c0_9 = arith.constant 0 : index
    %15 = vector.load %arg1[%c0_8, %c0_9] : memref<8x34xbf16, #tpu.memory_space<vmem>>, vector<8x34xbf16>
    %c0_10 = arith.constant 0 : index
    %c0_11 = arith.constant 0 : index
    %16 = vector.load %arg4[%c0_10, %c0_11] : memref<34x128xbf16, #tpu.memory_space<vmem>>, vector<34x128xbf16>
    %cst_12 = arith.constant dense<0.000000e+00> : vector<8x128xf32>
    %17 = tpu.matmul %15, %16, %cst_12 {dimension_numbers = #tpu.dot_dimension_numbers<[1], [0], [0], [1], [0, 0, 1, 1], [], []>} : vector<8x34xbf16>, vector<34x128xbf16>, vector<8x128xf32> -> vector<8x128xf32>
    %c0_13 = arith.constant 0 : index
    %c0_14 = arith.constant 0 : index
    %c0_15 = arith.constant 0 : index
    %18 = vector.load %arg2[%c0_13, %c0_14, %c0_15] : memref<8x8x1xf32, #tpu.memory_space<vmem>>, vector<1x8x1xf32>
    %19 = vector.shape_cast %18 : vector<1x8x1xf32> to vector<8x1xf32>
    %20 = vector.broadcast %19 : vector<8x1xf32> to vector<8x128xf32>
    %21 = vector.broadcast %13 : vector<1x128xf32> to vector<8x128xf32>
    %22 = arith.mulf %20, %21 : vector<8x128xf32>
    %23 = arith.addf %17, %22 : vector<8x128xf32>
    %c0_16 = arith.constant 0 : index
    %c0_17 = arith.constant 0 : index
    %24 = vector.load %arg6[%c0_16, %c0_17] : memref<1x128xf32, #tpu.memory_space<vmem>>, vector<1x128xf32>
    %25 = vector.broadcast %24 : vector<1x128xf32> to vector<8x128xf32>
    %26 = arith.addf %23, %25 : vector<8x128xf32>
    %c0_18 = arith.constant 0 : index
    %c0_19 = arith.constant 0 : index
    %27 = vector.load %arg3[%c0_18, %c0_19] : memref<8x32xf32, #tpu.memory_space<vmem>>, vector<8x32xf32>
    %28 = arith.mulf %26, %8 : vector<8x128xf32>
    %29 = arith.negf %28 : vector<8x128xf32>
    %30 = math.exp %29 : vector<8x128xf32>
    %cst_20 = arith.constant 1.000000e+00 : f32
    %31 = vector.broadcast %cst_20 : f32 to vector<8x128xf32>
    %32 = arith.addf %31, %30 : vector<8x128xf32>
    %33 = arith.divf %31, %32 : vector<8x128xf32>
    %34 = arith.mulf %33, %8 : vector<8x128xf32>
    %35 = arith.subf %34, %11 : vector<8x128xf32>
    %36 = vector.extract_strided_slice %35 {offsets = [0, 0], sizes = [8, 32], strides = [1, 1]} : vector<8x128xf32> to vector<8x32xf32>
    %37 = vector.extract_strided_slice %35 {offsets = [0, 32], sizes = [8, 32], strides = [1, 1]} : vector<8x128xf32> to vector<8x32xf32>
    %38 = vector.extract_strided_slice %35 {offsets = [0, 64], sizes = [8, 32], strides = [1, 1]} : vector<8x128xf32> to vector<8x32xf32>
    %39 = vector.extract_strided_slice %35 {offsets = [0, 96], sizes = [8, 32], strides = [1, 1]} : vector<8x128xf32> to vector<8x32xf32>
    %40 = arith.mulf %37, %27 : vector<8x32xf32>
    %41 = arith.mulf %36, %38 : vector<8x32xf32>
    %42 = arith.addf %40, %41 : vector<8x32xf32>
    %43 = math.tanh %42 : vector<8x32xf32>
    %44 = arith.mulf %39, %43 : vector<8x32xf32>
    %c0_21 = arith.constant 0 : index
    %c0_22 = arith.constant 0 : index
    %45 = vector.load %arg12[%c0_21, %c0_22] : memref<64x32xf32, #tpu.memory_space<vmem>>, vector<8x32xf32>
    tpu.vector_store %arg12[%c0_21, %c0_22], %44 {strides = array<i32>} : memref<64x32xf32, #tpu.memory_space<vmem>>, vector<8x32xf32>,
    %46 = arith.truncf %44 : vector<8x32xf32> to vector<8x32xbf16>
    %cst_23 = arith.constant dense<0.000000e+00> : vector<8x128xf32>
    %47 = tpu.matmul %46, %12, %cst_23 {dimension_numbers = #tpu.dot_dimension_numbers<[1], [0], [0], [1], [0, 0, 1, 1], [], []>} : vector<8x32xbf16>, vector<32x128xbf16>, vector<8x128xf32> -> vector<8x128xf32>
    %c1 = arith.constant 1 : index
    %c0_24 = arith.constant 0 : index
    %c0_25 = arith.constant 0 : index
    %48 = vector.load %arg2[%c1, %c0_24, %c0_25] : memref<8x8x1xf32, #tpu.memory_space<vmem>>, vector<1x8x1xf32>
    %49 = vector.shape_cast %48 : vector<1x8x1xf32> to vector<8x1xf32>
    %50 = vector.broadcast %49 : vector<8x1xf32> to vector<8x128xf32>
    %51 = vector.broadcast %13 : vector<1x128xf32> to vector<8x128xf32>
    %52 = arith.mulf %50, %51 : vector<8x128xf32>
    %53 = arith.addf %47, %52 : vector<8x128xf32>
    %54 = vector.broadcast %14 : vector<1x128xf32> to vector<8x128xf32>
    %55 = arith.addf %53, %54 : vector<8x128xf32>
    %56 = arith.mulf %55, %8 : vector<8x128xf32>
    %57 = arith.negf %56 : vector<8x128xf32>
    %58 = math.exp %57 : vector<8x128xf32>
    %cst_26 = arith.constant 1.000000e+00 : f32
    %59 = vector.broadcast %cst_26 : f32 to vector<8x128xf32>
    %60 = arith.addf %59, %58 : vector<8x128xf32>
    %61 = arith.divf %59, %60 : vector<8x128xf32>
    %62 = arith.mulf %61, %8 : vector<8x128xf32>
    %63 = arith.subf %62, %11 : vector<8x128xf32>
    %64 = vector.extract_strided_slice %63 {offsets = [0, 0], sizes = [8, 32], strides = [1, 1]} : vector<8x128xf32> to vector<8x32xf32>
    %65 = vector.extract_strided_slice %63 {offsets = [0, 32], sizes = [8, 32], strides = [1, 1]} : vector<8x128xf32> to vector<8x32xf32>
    %66 = vector.extract_strided_slice %63 {offsets = [0, 64], sizes = [8, 32], strides = [1, 1]} : vector<8x128xf32> to vector<8x32xf32>
    %67 = vector.extract_strided_slice %63 {offsets = [0, 96], sizes = [8, 32], strides = [1, 1]} : vector<8x128xf32> to vector<8x32xf32>
    %68 = arith.mulf %65, %42 : vector<8x32xf32>
    %69 = arith.mulf %64, %66 : vector<8x32xf32>
    %70 = arith.addf %68, %69 : vector<8x32xf32>
    %71 = math.tanh %70 : vector<8x32xf32>
    %72 = arith.mulf %67, %71 : vector<8x32xf32>
    %c8 = arith.constant 8 : index
    %c0_27 = arith.constant 0 : index
    %73 = vector.load %arg12[%c8, %c0_27] : memref<64x32xf32, #tpu.memory_space<vmem>>, vector<8x32xf32>
    tpu.vector_store %arg12[%c8, %c0_27], %72 {strides = array<i32>} : memref<64x32xf32, #tpu.memory_space<vmem>>, vector<8x32xf32>,
    %74 = arith.truncf %72 : vector<8x32xf32> to vector<8x32xbf16>
    %cst_28 = arith.constant dense<0.000000e+00> : vector<8x128xf32>
    %75 = tpu.matmul %74, %12, %cst_28 {dimension_numbers = #tpu.dot_dimension_numbers<[1], [0], [0], [1], [0, 0, 1, 1], [], []>} : vector<8x32xbf16>, vector<32x128xbf16>, vector<8x128xf32> -> vector<8x128xf32>
    %c2 = arith.constant 2 : index
    %c0_29 = arith.constant 0 : index
    %c0_30 = arith.constant 0 : index
    %76 = vector.load %arg2[%c2, %c0_29, %c0_30] : memref<8x8x1xf32, #tpu.memory_space<vmem>>, vector<1x8x1xf32>
    %77 = vector.shape_cast %76 : vector<1x8x1xf32> to vector<8x1xf32>
    %78 = vector.broadcast %77 : vector<8x1xf32> to vector<8x128xf32>
    %79 = vector.broadcast %13 : vector<1x128xf32> to vector<8x128xf32>
    %80 = arith.mulf %78, %79 : vector<8x128xf32>
    %81 = arith.addf %75, %80 : vector<8x128xf32>
    %82 = vector.broadcast %14 : vector<1x128xf32> to vector<8x128xf32>
    %83 = arith.addf %81, %82 : vector<8x128xf32>
    %84 = arith.mulf %83, %8 : vector<8x128xf32>
    %85 = arith.negf %84 : vector<8x128xf32>
    %86 = math.exp %85 : vector<8x128xf32>
    %cst_31 = arith.constant 1.000000e+00 : f32
    %87 = vector.broadcast %cst_31 : f32 to vector<8x128xf32>
    %88 = arith.addf %87, %86 : vector<8x128xf32>
    %89 = arith.divf %87, %88 : vector<8x128xf32>
    %90 = arith.mulf %89, %8 : vector<8x128xf32>
    %91 = arith.subf %90, %11 : vector<8x128xf32>
    %92 = vector.extract_strided_slice %91 {offsets = [0, 0], sizes = [8, 32], strides = [1, 1]} : vector<8x128xf32> to vector<8x32xf32>
    %93 = vector.extract_strided_slice %91 {offsets = [0, 32], sizes = [8, 32], strides = [1, 1]} : vector<8x128xf32> to vector<8x32xf32>
    %94 = vector.extract_strided_slice %91 {offsets = [0, 64], sizes = [8, 32], strides = [1, 1]} : vector<8x128xf32> to vector<8x32xf32>
    %95 = vector.extract_strided_slice %91 {offsets = [0, 96], sizes = [8, 32], strides = [1, 1]} : vector<8x128xf32> to vector<8x32xf32>
    %96 = arith.mulf %93, %70 : vector<8x32xf32>
    %97 = arith.mulf %92, %94 : vector<8x32xf32>
    %98 = arith.addf %96, %97 : vector<8x32xf32>
    %99 = math.tanh %98 : vector<8x32xf32>
    %100 = arith.mulf %95, %99 : vector<8x32xf32>
    %c16 = arith.constant 16 : index
    %c0_32 = arith.constant 0 : index
    %101 = vector.load %arg12[%c16, %c0_32] : memref<64x32xf32, #tpu.memory_space<vmem>>, vector<8x32xf32>
    tpu.vector_store %arg12[%c16, %c0_32], %100 {strides = array<i32>} : memref<64x32xf32, #tpu.memory_space<vmem>>, vector<8x32xf32>,
    %102 = arith.truncf %100 : vector<8x32xf32> to vector<8x32xbf16>
    %cst_33 = arith.constant dense<0.000000e+00> : vector<8x128xf32>
    %103 = tpu.matmul %102, %12, %cst_33 {dimension_numbers = #tpu.dot_dimension_numbers<[1], [0], [0], [1], [0, 0, 1, 1], [], []>} : vector<8x32xbf16>, vector<32x128xbf16>, vector<8x128xf32> -> vector<8x128xf32>
    %c3 = arith.constant 3 : index
    %c0_34 = arith.constant 0 : index
    %c0_35 = arith.constant 0 : index
    %104 = vector.load %arg2[%c3, %c0_34, %c0_35] : memref<8x8x1xf32, #tpu.memory_space<vmem>>, vector<1x8x1xf32>
    %105 = vector.shape_cast %104 : vector<1x8x1xf32> to vector<8x1xf32>
    %106 = vector.broadcast %105 : vector<8x1xf32> to vector<8x128xf32>
    %107 = vector.broadcast %13 : vector<1x128xf32> to vector<8x128xf32>
    %108 = arith.mulf %106, %107 : vector<8x128xf32>
    %109 = arith.addf %103, %108 : vector<8x128xf32>
    %110 = vector.broadcast %14 : vector<1x128xf32> to vector<8x128xf32>
    %111 = arith.addf %109, %110 : vector<8x128xf32>
    %112 = arith.mulf %111, %8 : vector<8x128xf32>
    %113 = arith.negf %112 : vector<8x128xf32>
    %114 = math.exp %113 : vector<8x128xf32>
    %cst_36 = arith.constant 1.000000e+00 : f32
    %115 = vector.broadcast %cst_36 : f32 to vector<8x128xf32>
    %116 = arith.addf %115, %114 : vector<8x128xf32>
    %117 = arith.divf %115, %116 : vector<8x128xf32>
    %118 = arith.mulf %117, %8 : vector<8x128xf32>
    %119 = arith.subf %118, %11 : vector<8x128xf32>
    %120 = vector.extract_strided_slice %119 {offsets = [0, 0], sizes = [8, 32], strides = [1, 1]} : vector<8x128xf32> to vector<8x32xf32>
    %121 = vector.extract_strided_slice %119 {offsets = [0, 32], sizes = [8, 32], strides = [1, 1]} : vector<8x128xf32> to vector<8x32xf32>
    %122 = vector.extract_strided_slice %119 {offsets = [0, 64], sizes = [8, 32], strides = [1, 1]} : vector<8x128xf32> to vector<8x32xf32>
    %123 = vector.extract_strided_slice %119 {offsets = [0, 96], sizes = [8, 32], strides = [1, 1]} : vector<8x128xf32> to vector<8x32xf32>
    %124 = arith.mulf %121, %98 : vector<8x32xf32>
    %125 = arith.mulf %120, %122 : vector<8x32xf32>
    %126 = arith.addf %124, %125 : vector<8x32xf32>
    %127 = math.tanh %126 : vector<8x32xf32>
    %128 = arith.mulf %123, %127 : vector<8x32xf32>
    %c24 = arith.constant 24 : index
    %c0_37 = arith.constant 0 : index
    %129 = vector.load %arg12[%c24, %c0_37] : memref<64x32xf32, #tpu.memory_space<vmem>>, vector<8x32xf32>
    tpu.vector_store %arg12[%c24, %c0_37], %128 {strides = array<i32>} : memref<64x32xf32, #tpu.memory_space<vmem>>, vector<8x32xf32>,
    %130 = arith.truncf %128 : vector<8x32xf32> to vector<8x32xbf16>
    %cst_38 = arith.constant dense<0.000000e+00> : vector<8x128xf32>
    %131 = tpu.matmul %130, %12, %cst_38 {dimension_numbers = #tpu.dot_dimension_numbers<[1], [0], [0], [1], [0, 0, 1, 1], [], []>} : vector<8x32xbf16>, vector<32x128xbf16>, vector<8x128xf32> -> vector<8x128xf32>
    %c4 = arith.constant 4 : index
    %c0_39 = arith.constant 0 : index
    %c0_40 = arith.constant 0 : index
    %132 = vector.load %arg2[%c4, %c0_39, %c0_40] : memref<8x8x1xf32, #tpu.memory_space<vmem>>, vector<1x8x1xf32>
    %133 = vector.shape_cast %132 : vector<1x8x1xf32> to vector<8x1xf32>
    %134 = vector.broadcast %133 : vector<8x1xf32> to vector<8x128xf32>
    %135 = vector.broadcast %13 : vector<1x128xf32> to vector<8x128xf32>
    %136 = arith.mulf %134, %135 : vector<8x128xf32>
    %137 = arith.addf %131, %136 : vector<8x128xf32>
    %138 = vector.broadcast %14 : vector<1x128xf32> to vector<8x128xf32>
    %139 = arith.addf %137, %138 : vector<8x128xf32>
    %140 = arith.mulf %139, %8 : vector<8x128xf32>
    %141 = arith.negf %140 : vector<8x128xf32>
    %142 = math.exp %141 : vector<8x128xf32>
    %cst_41 = arith.constant 1.000000e+00 : f32
    %143 = vector.broadcast %cst_41 : f32 to vector<8x128xf32>
    %144 = arith.addf %143, %142 : vector<8x128xf32>
    %145 = arith.divf %143, %144 : vector<8x128xf32>
    %146 = arith.mulf %145, %8 : vector<8x128xf32>
    %147 = arith.subf %146, %11 : vector<8x128xf32>
    %148 = vector.extract_strided_slice %147 {offsets = [0, 0], sizes = [8, 32], strides = [1, 1]} : vector<8x128xf32> to vector<8x32xf32>
    %149 = vector.extract_strided_slice %147 {offsets = [0, 32], sizes = [8, 32], strides = [1, 1]} : vector<8x128xf32> to vector<8x32xf32>
    %150 = vector.extract_strided_slice %147 {offsets = [0, 64], sizes = [8, 32], strides = [1, 1]} : vector<8x128xf32> to vector<8x32xf32>
    %151 = vector.extract_strided_slice %147 {offsets = [0, 96], sizes = [8, 32], strides = [1, 1]} : vector<8x128xf32> to vector<8x32xf32>
    %152 = arith.mulf %149, %126 : vector<8x32xf32>
    %153 = arith.mulf %148, %150 : vector<8x32xf32>
    %154 = arith.addf %152, %153 : vector<8x32xf32>
    %155 = math.tanh %154 : vector<8x32xf32>
    %156 = arith.mulf %151, %155 : vector<8x32xf32>
    %c32 = arith.constant 32 : index
    %c0_42 = arith.constant 0 : index
    %157 = vector.load %arg12[%c32, %c0_42] : memref<64x32xf32, #tpu.memory_space<vmem>>, vector<8x32xf32>
    tpu.vector_store %arg12[%c32, %c0_42], %156 {strides = array<i32>} : memref<64x32xf32, #tpu.memory_space<vmem>>, vector<8x32xf32>,
    %158 = arith.truncf %156 : vector<8x32xf32> to vector<8x32xbf16>
    %cst_43 = arith.constant dense<0.000000e+00> : vector<8x128xf32>
    %159 = tpu.matmul %158, %12, %cst_43 {dimension_numbers = #tpu.dot_dimension_numbers<[1], [0], [0], [1], [0, 0, 1, 1], [], []>} : vector<8x32xbf16>, vector<32x128xbf16>, vector<8x128xf32> -> vector<8x128xf32>
    %c5 = arith.constant 5 : index
    %c0_44 = arith.constant 0 : index
    %c0_45 = arith.constant 0 : index
    %160 = vector.load %arg2[%c5, %c0_44, %c0_45] : memref<8x8x1xf32, #tpu.memory_space<vmem>>, vector<1x8x1xf32>
    %161 = vector.shape_cast %160 : vector<1x8x1xf32> to vector<8x1xf32>
    %162 = vector.broadcast %161 : vector<8x1xf32> to vector<8x128xf32>
    %163 = vector.broadcast %13 : vector<1x128xf32> to vector<8x128xf32>
    %164 = arith.mulf %162, %163 : vector<8x128xf32>
    %165 = arith.addf %159, %164 : vector<8x128xf32>
    %166 = vector.broadcast %14 : vector<1x128xf32> to vector<8x128xf32>
    %167 = arith.addf %165, %166 : vector<8x128xf32>
    %168 = arith.mulf %167, %8 : vector<8x128xf32>
    %169 = arith.negf %168 : vector<8x128xf32>
    %170 = math.exp %169 : vector<8x128xf32>
    %cst_46 = arith.constant 1.000000e+00 : f32
    %171 = vector.broadcast %cst_46 : f32 to vector<8x128xf32>
    %172 = arith.addf %171, %170 : vector<8x128xf32>
    %173 = arith.divf %171, %172 : vector<8x128xf32>
    %174 = arith.mulf %173, %8 : vector<8x128xf32>
    %175 = arith.subf %174, %11 : vector<8x128xf32>
    %176 = vector.extract_strided_slice %175 {offsets = [0, 0], sizes = [8, 32], strides = [1, 1]} : vector<8x128xf32> to vector<8x32xf32>
    %177 = vector.extract_strided_slice %175 {offsets = [0, 32], sizes = [8, 32], strides = [1, 1]} : vector<8x128xf32> to vector<8x32xf32>
    %178 = vector.extract_strided_slice %175 {offsets = [0, 64], sizes = [8, 32], strides = [1, 1]} : vector<8x128xf32> to vector<8x32xf32>
    %179 = vector.extract_strided_slice %175 {offsets = [0, 96], sizes = [8, 32], strides = [1, 1]} : vector<8x128xf32> to vector<8x32xf32>
    %180 = arith.mulf %177, %154 : vector<8x32xf32>
    %181 = arith.mulf %176, %178 : vector<8x32xf32>
    %182 = arith.addf %180, %181 : vector<8x32xf32>
    %183 = math.tanh %182 : vector<8x32xf32>
    %184 = arith.mulf %179, %183 : vector<8x32xf32>
    %c40 = arith.constant 40 : index
    %c0_47 = arith.constant 0 : index
    %185 = vector.load %arg12[%c40, %c0_47] : memref<64x32xf32, #tpu.memory_space<vmem>>, vector<8x32xf32>
    tpu.vector_store %arg12[%c40, %c0_47], %184 {strides = array<i32>} : memref<64x32xf32, #tpu.memory_space<vmem>>, vector<8x32xf32>,
    %186 = arith.truncf %184 : vector<8x32xf32> to vector<8x32xbf16>
    %cst_48 = arith.constant dense<0.000000e+00> : vector<8x128xf32>
    %187 = tpu.matmul %186, %12, %cst_48 {dimension_numbers = #tpu.dot_dimension_numbers<[1], [0], [0], [1], [0, 0, 1, 1], [], []>} : vector<8x32xbf16>, vector<32x128xbf16>, vector<8x128xf32> -> vector<8x128xf32>
    %c6 = arith.constant 6 : index
    %c0_49 = arith.constant 0 : index
    %c0_50 = arith.constant 0 : index
    %188 = vector.load %arg2[%c6, %c0_49, %c0_50] : memref<8x8x1xf32, #tpu.memory_space<vmem>>, vector<1x8x1xf32>
    %189 = vector.shape_cast %188 : vector<1x8x1xf32> to vector<8x1xf32>
    %190 = vector.broadcast %189 : vector<8x1xf32> to vector<8x128xf32>
    %191 = vector.broadcast %13 : vector<1x128xf32> to vector<8x128xf32>
    %192 = arith.mulf %190, %191 : vector<8x128xf32>
    %193 = arith.addf %187, %192 : vector<8x128xf32>
    %194 = vector.broadcast %14 : vector<1x128xf32> to vector<8x128xf32>
    %195 = arith.addf %193, %194 : vector<8x128xf32>
    %196 = arith.mulf %195, %8 : vector<8x128xf32>
    %197 = arith.negf %196 : vector<8x128xf32>
    %198 = math.exp %197 : vector<8x128xf32>
    %cst_51 = arith.constant 1.000000e+00 : f32
    %199 = vector.broadcast %cst_51 : f32 to vector<8x128xf32>
    %200 = arith.addf %199, %198 : vector<8x128xf32>
    %201 = arith.divf %199, %200 : vector<8x128xf32>
    %202 = arith.mulf %201, %8 : vector<8x128xf32>
    %203 = arith.subf %202, %11 : vector<8x128xf32>
    %204 = vector.extract_strided_slice %203 {offsets = [0, 0], sizes = [8, 32], strides = [1, 1]} : vector<8x128xf32> to vector<8x32xf32>
    %205 = vector.extract_strided_slice %203 {offsets = [0, 32], sizes = [8, 32], strides = [1, 1]} : vector<8x128xf32> to vector<8x32xf32>
    %206 = vector.extract_strided_slice %203 {offsets = [0, 64], sizes = [8, 32], strides = [1, 1]} : vector<8x128xf32> to vector<8x32xf32>
    %207 = vector.extract_strided_slice %203 {offsets = [0, 96], sizes = [8, 32], strides = [1, 1]} : vector<8x128xf32> to vector<8x32xf32>
    %208 = arith.mulf %205, %182 : vector<8x32xf32>
    %209 = arith.mulf %204, %206 : vector<8x32xf32>
    %210 = arith.addf %208, %209 : vector<8x32xf32>
    %211 = math.tanh %210 : vector<8x32xf32>
    %212 = arith.mulf %207, %211 : vector<8x32xf32>
    %c48 = arith.constant 48 : index
    %c0_52 = arith.constant 0 : index
    %213 = vector.load %arg12[%c48, %c0_52] : memref<64x32xf32, #tpu.memory_space<vmem>>, vector<8x32xf32>
    tpu.vector_store %arg12[%c48, %c0_52], %212 {strides = array<i32>} : memref<64x32xf32, #tpu.memory_space<vmem>>, vector<8x32xf32>,
    %214 = arith.truncf %212 : vector<8x32xf32> to vector<8x32xbf16>
    %cst_53 = arith.constant dense<0.000000e+00> : vector<8x128xf32>
    %215 = tpu.matmul %214, %12, %cst_53 {dimension_numbers = #tpu.dot_dimension_numbers<[1], [0], [0], [1], [0, 0, 1, 1], [], []>} : vector<8x32xbf16>, vector<32x128xbf16>, vector<8x128xf32> -> vector<8x128xf32>
    %c7 = arith.constant 7 : index
    %c0_54 = arith.constant 0 : index
    %c0_55 = arith.constant 0 : index
    %216 = vector.load %arg2[%c7, %c0_54, %c0_55] : memref<8x8x1xf32, #tpu.memory_space<vmem>>, vector<1x8x1xf32>
    %217 = vector.shape_cast %216 : vector<1x8x1xf32> to vector<8x1xf32>
    %218 = vector.broadcast %217 : vector<8x1xf32> to vector<8x128xf32>
    %219 = vector.broadcast %13 : vector<1x128xf32> to vector<8x128xf32>
    %220 = arith.mulf %218, %219 : vector<8x128xf32>
    %221 = arith.addf %215, %220 : vector<8x128xf32>
    %222 = vector.broadcast %14 : vector<1x128xf32> to vector<8x128xf32>
    %223 = arith.addf %221, %222 : vector<8x128xf32>
    %224 = arith.mulf %223, %8 : vector<8x128xf32>
    %225 = arith.negf %224 : vector<8x128xf32>
    %226 = math.exp %225 : vector<8x128xf32>
    %cst_56 = arith.constant 1.000000e+00 : f32
    %227 = vector.broadcast %cst_56 : f32 to vector<8x128xf32>
    %228 = arith.addf %227, %226 : vector<8x128xf32>
    %229 = arith.divf %227, %228 : vector<8x128xf32>
    %230 = arith.mulf %229, %8 : vector<8x128xf32>
    %231 = arith.subf %230, %11 : vector<8x128xf32>
    %232 = vector.extract_strided_slice %231 {offsets = [0, 0], sizes = [8, 32], strides = [1, 1]} : vector<8x128xf32> to vector<8x32xf32>
    %233 = vector.extract_strided_slice %231 {offsets = [0, 32], sizes = [8, 32], strides = [1, 1]} : vector<8x128xf32> to vector<8x32xf32>
    %234 = vector.extract_strided_slice %231 {offsets = [0, 64], sizes = [8, 32], strides = [1, 1]} : vector<8x128xf32> to vector<8x32xf32>
    %235 = vector.extract_strided_slice %231 {offsets = [0, 96], sizes = [8, 32], strides = [1, 1]} : vector<8x128xf32> to vector<8x32xf32>
    %236 = arith.mulf %233, %210 : vector<8x32xf32>
    %237 = arith.mulf %232, %234 : vector<8x32xf32>
    %238 = arith.addf %236, %237 : vector<8x32xf32>
    %239 = math.tanh %238 : vector<8x32xf32>
    %240 = arith.mulf %235, %239 : vector<8x32xf32>
    %c56 = arith.constant 56 : index
    %c0_57 = arith.constant 0 : index
    %241 = vector.load %arg12[%c56, %c0_57] : memref<64x32xf32, #tpu.memory_space<vmem>>, vector<8x32xf32>
    tpu.vector_store %arg12[%c56, %c0_57], %240 {strides = array<i32>} : memref<64x32xf32, #tpu.memory_space<vmem>>, vector<8x32xf32>,
    %c0_58 = arith.constant 0 : index
    %c0_59 = arith.constant 0 : index
    %242 = vector.load %arg12[%c0_58, %c0_59] : memref<64x32xf32, #tpu.memory_space<vmem>>, vector<64x32xf32>
    %243 = arith.truncf %242 : vector<64x32xf32> to vector<64x32xbf16>
    %c0_60 = arith.constant 0 : index
    %c0_61 = arith.constant 0 : index
    %244 = vector.load %arg9[%c0_60, %c0_61] : memref<32x2xbf16, #tpu.memory_space<vmem>>, vector<32x2xbf16>
    %cst_62 = arith.constant dense<0.000000e+00> : vector<64x2xf32>
    %245 = tpu.matmul %243, %244, %cst_62 {dimension_numbers = #tpu.dot_dimension_numbers<[1], [0], [0], [1], [0, 0, 1, 1], [], []>} : vector<64x32xbf16>, vector<32x2xbf16>, vector<64x2xf32> -> vector<64x2xf32>
    %c0_63 = arith.constant 0 : index
    %c0_64 = arith.constant 0 : index
    %246 = vector.load %arg10[%c0_63, %c0_64] : memref<1x2xf32, #tpu.memory_space<vmem>>, vector<1x2xf32>
    %247 = vector.broadcast %246 : vector<1x2xf32> to vector<64x2xf32>
    %248 = arith.addf %245, %247 : vector<64x2xf32>
    %c0_65 = arith.constant 0 : index
    %c0_66 = arith.constant 0 : index
    %249 = vector.load %arg11[%c0_65, %c0_66] : memref<64x2xf32, #tpu.memory_space<vmem>>, vector<64x2xf32>
    tpu.vector_store %arg11[%c0_65, %c0_66], %248 {strides = array<i32>} : memref<64x2xf32, #tpu.memory_space<vmem>>, vector<64x2xf32>,
    return
  }
  func.func @transform_0(%arg0: i32) -> (i32, i32) {
    %c0_i32 = arith.constant 0 : i32
    %c0_i32_0 = arith.constant 0 : i32
    return %arg0, %c0_i32 : i32, i32
  }
  func.func @transform_1(%arg0: i32) -> (i32, i32, i32) {
    %c0_i32 = arith.constant 0 : i32
    %c0_i32_0 = arith.constant 0 : i32
    %c0_i32_1 = arith.constant 0 : i32
    return %c0_i32, %arg0, %c0_i32_0 : i32, i32, i32
  }
  func.func @transform_2(%arg0: i32) -> (i32, i32) {
    %c0_i32 = arith.constant 0 : i32
    %c0_i32_0 = arith.constant 0 : i32
    return %arg0, %c0_i32 : i32, i32
  }
  func.func @transform_3(%arg0: i32) -> (i32, i32) {
    %c0_i32 = arith.constant 0 : i32
    %c0_i32_0 = arith.constant 0 : i32
    %c0_i32_1 = arith.constant 0 : i32
    return %c0_i32, %c0_i32_0 : i32, i32
  }
  func.func @transform_4(%arg0: i32) -> (i32, i32) {
    %c0_i32 = arith.constant 0 : i32
    %c0_i32_0 = arith.constant 0 : i32
    %c0_i32_1 = arith.constant 0 : i32
    return %c0_i32, %c0_i32_0 : i32, i32
  }
  func.func @transform_5(%arg0: i32) -> (i32, i32) {
    %c0_i32 = arith.constant 0 : i32
    %c0_i32_0 = arith.constant 0 : i32
    %c0_i32_1 = arith.constant 0 : i32
    return %c0_i32, %c0_i32_0 : i32, i32
  }
  func.func @transform_6(%arg0: i32) -> (i32, i32) {
    %c0_i32 = arith.constant 0 : i32
    %c0_i32_0 = arith.constant 0 : i32
    %c0_i32_1 = arith.constant 0 : i32
    return %c0_i32, %c0_i32_0 : i32, i32
  }
  func.func @transform_7(%arg0: i32) -> (i32, i32) {
    %c0_i32 = arith.constant 0 : i32
    %c0_i32_0 = arith.constant 0 : i32
    %c0_i32_1 = arith.constant 0 : i32
    return %c0_i32, %c0_i32_0 : i32, i32
  }
  func.func @transform_8(%arg0: i32) -> (i32, i32) {
    %c0_i32 = arith.constant 0 : i32
    %c0_i32_0 = arith.constant 0 : i32
    %c0_i32_1 = arith.constant 0 : i32
    return %c0_i32, %c0_i32_0 : i32, i32
  }
  func.func @transform_9(%arg0: i32) -> (i32, i32) {
    %c0_i32 = arith.constant 0 : i32
    %c0_i32_0 = arith.constant 0 : i32
    %c0_i32_1 = arith.constant 0 : i32
    return %c0_i32, %c0_i32_0 : i32, i32
  }
  func.func @transform_10(%arg0: i32) -> (i32, i32) {
    %c0_i32 = arith.constant 0 : i32
    %c0_i32_0 = arith.constant 0 : i32
    return %arg0, %c0_i32 : i32, i32
  }
}

</mosaic_0001>

<bundles_post_ra>
// kernel: tpu_custom_call.1
= control target key start
LH: loop header
LB: loop body
LE: loop exit
PB: predicated region body
PF: predicated region fallthrough
CT: control target
= control target key end

     0   :  { %v887_v1 = vmov 0   ;;  %vm84_vm0 = vcmask 1040384   ;;  %s888_s19 = smov 32   ;;  %vm80_vm1 = vcmask 277504   ;;  %v36_v10 = vlaneseq  ;;  %s1186_s3 = inlined_call_operand.vmem [shape: bf16[34,128], index: 3, kind: input, shape index: {}]   ;;  %s1187_s1 = inlined_call_operand.vmem [shape: f32[8,8,1], index: 1, kind: input, shape index: {}]   ;;  %s1188_s2 = inlined_call_operand.vmem [shape: f32[8,32], index: 2, kind: input, shape index: {}]   ;;  %s1189_s7 = inlined_call_operand.vmem [shape: f32[1,128], index: 7, kind: input, shape index: {}]   ;;  %s1190_s5 = inlined_call_operand.vmem [shape: f32[1,128], index: 5, kind: input, shape index: {}]   ;;  %s1191_s0 = inlined_call_operand.vmem [shape: bf16[8,34], index: 0, kind: input, shape index: {}]   ;;  %s1192_s6 = inlined_call_operand.vmem [shape: f32[1,128], index: 6, kind: input, shape index: {}]   ;;  %s1193_s4 = inlined_call_operand.vmem [shape: bf16[32,128], index: 4, kind: input, shape index: {}]   ;;  %s1194_s8 = inlined_call_operand.vmem [shape: bf16[32,2], index: 8, kind: input, shape index: {}]   ;;  %s1195_s9 = inlined_call_operand.vmem [shape: f32[1,2], index: 9, kind: input, shape index: {}]   ;;  %s1196_s10 = inlined_call_operand.vmem [shape: f32[64,2], index: 10, kind: output, shape index: {}]  }
   0x1   :  { %v54_v0 = vld [vmem:[%s1186_s3 + $0x10] sm:$0x1]  ;;  %832 = vset.pattern.permute.xlu0 %v887_v1  ;;  %833 = vset.pattern.permute.xlu2 %v887_v1  ;;  %v55_v3 = vld [vmem:[%s1187_s1] sm:$0xff]  ;;  %v822_v7 = vld [vmem:[%s1186_s3 + $0x8] sm:$0xff]  ;;  %v889_v19 = vmov 1.0   ;;  %v890_v36 = vmov 0.0  }
   0x2   :  { %v74_v2 = vunpack.c.l.b16 %v54_v0  ;;  %v106_v4 = vld [vmem:[%s1188_s2] sm:$0xff]  ;;  %834 = vset.pattern.permute.xlu1 %v887_v1  ;;  %58 = vperm.xlu0 %832, %v55_v3   ;;  %v37_v11 = vand.u32 127, %v36_v10  ;;  %v778_v41 = vld [vmem:[%s1187_s1 + $0x8] sm:$0xff]  ;;  %vm154_vm9 = vcmask 261120  }
   0x3   :  { %130 = vrot.lane.b32.xlu1 %v106_v4, %s888_s19  ;;  %v821_v8 = vld [vmem:[%s1186_s3] sm:$0xff]  ;;  %v820_v49 = vld [vmem:[%s1193_s4 + $0x8] sm:$0xff] }
   0x4   :  { %v77_v5 = vpack.c.b16 %v74_v2, %v74_v2  ;;  %v49_v9 = vld [vmem:[%s1191_s0] sm:$0xf]  ;;  %vm38_vm2 = vcmp.ge.s32.totalorder %v37_v11, 64  ;;  %vm39_vm3 = vcmp.lt.s32.totalorder %v37_v11, 96  ;;  %189 = vmatpush.bf16.msra.mxu3 %v820_v49  ;;  %411 = vmatpush.bf16.msra.mxu1 %v820_v49 }
   0x5   :  { %v969_v12 = vld [vmem:[%s1189_s7] ss:$0 sm:$0xff]  ;;  %vm972_vm4 = vmand %vm38_vm2, %vm39_vm3  ;;  %484 = vmatpush.bf16.msra.mxu2 %v820_v49 }
   0x6   :  { %v86_v6 = vsel %vm84_vm0, %v77_v5, 0  ;;  %v836_v16 = vld [vmem:[%s1190_s5] ss:$0 sm:$0xff]  ;;  %v981_v20 = vsel %vm972_vm4, 2.0, %v889_v19  ;;  %v986_v37 = vsel %vm972_vm4, 1.0, %v890_v36  ;;  %s891_s5 = smov 64  }
   0x7   :  { %93 = vmatpush.bf16.msra.mxu0 %v86_v6  ;;  %v819_v50 = vld [vmem:[%s1193_s4] sm:$0xff] }
   0x8   :  { %190 = vmatpush.bf16.msra.mxu3 %v819_v50  ;;  %412 = vmatpush.bf16.msra.mxu1 %v819_v50  ;;  %v1012_v57 = vld [vmem:[%s1192_s6] ss:$0 sm:$0xff] }
   0x9   :  { %485 = vmatpush.bf16.msra.mxu2 %v819_v50 }
   0xb   :  { %94 = vmatpush.bf16.msra.mxu0 %v822_v7 }
   0xc   :  { %338 = vmatpush.bf16.msrb.mxu3 %v820_v49 }
   0xf   :  { %95 = vmatpush.bf16.msra.mxu0 %v821_v8 }
  0x10   :  { %339 = vmatpush.bf16.msrb.mxu3 %v819_v50 }
  0x12   :  { %776 = vmatmul.msk.bf16.vlgmr.msra.gmra.mxu0 %vm80_vm1, %v49_v9 }
  0x13   :  { %265 = vmatpush.bf16.msrb.mxu0 %v820_v49 }
  0x17   :  { %266 = vmatpush.bf16.msrb.mxu0 %v819_v50 }
  0x1b   :  { %630 = vmatpush.bf16.msra.mxu0 %v820_v49 }
  0x1f   :  { %631 = vmatpush.bf16.msra.mxu0 %v819_v50 }
  0x74   :  { %v59_v13 = vpop.permute.xlu0 %58 }
  0x75   :  { %v64_v14 = vmul.f32 %v969_v12, %v59_v13  ;;  %v131_v44 = vpop.permute.xlu1 %130 }
  0x8f   :  { %v97_v17 = vpop.f32.mrf.mxu0 }
  0x90   :  { %v98_v18 = vadd.f32 %v97_v17, %v64_v14 }
  0x92   :  { %v105_v21 = vadd.f32 %v836_v16, %v98_v18 }
  0x94   :  { %v107_v22 = vmul.f32 %v105_v21, %v981_v20 }
  0x96   :  { %v777_v23 = vmul.f32 -1.442695, %v107_v22 }
  0x97   :  { %v99_v24 = vpop.f32.mrf.mxu0 }
  0x98   :  { %839 = vpow2.f32 %v777_v23 }
  0x9e   :  { %v840_v25 = vpop.eup %839 }
  0x9f   :  { %v111_v26 = vadd.f32 1.0, %v840_v25  ;;  %v789_v25 = vld [vmem:[%s1187_s1 + $0x10] sm:$0xff] }
  0xa1   :  { %841 = vrcp.f32 %v111_v26  ;;  %v123_v30 = vand.u32 2147483648, %v111_v26  ;;  %v121_v32 = vand.u32 2147483647, %v111_v26  ;;  %vm117_vm6 = vweird.f32 %v111_v26 }
  0xa3   :  { %v124_v34 = vor.u32 1.1754944e-38, %v123_v30  ;;  %vm122_vm8 = vcmp.eq.f32.partialorder %v121_v32, 8.507059e+37 }
  0xa7   :  { %v842_v27 = vpop.eup %841 }
  0xa8   :  { %v113_v28 = vmul.f32 %v842_v27, %v111_v26  ;;  %vm118_vm5 = vweird.f32 %v842_v27 }
  0xa9   :  { %vm119_vm7 = vmor %vm117_vm6, %vm118_vm5 }
  0xaa   :  { %v114_v29 = vsub.f32 1.0, %v113_v28 }
  0xac   :  { %v115_v31 = vmul.f32 %v842_v27, %v114_v29 }
  0xae   :  { %v116_v33 = vadd.f32 %v842_v27, %v115_v31 }
  0xb0   :  { %v120_v35 = vsel %vm119_vm7, %v842_v27, %v116_v33 }
  0xb1   :  { %v125_v38 = vsel %vm122_vm8, %v124_v34, %v120_v35 }
  0xb2   :  { %v127_v39 = vmul.f32 %v125_v38, %v981_v20 }
  0xb4   :  { %v128_v40 = vsub.f32 %v127_v39, %v986_v37 }
  0xb6   :  { %135 = vrot.lane.b32.xlu0 %v128_v40, %s891_s5  ;;  %v133_v45 = vmul.f32 %v131_v44, %v128_v40 }
  0xbe   :  { %161 = vperm.xlu0 %832, %v778_v41  }
 0x128   :  { %v136_v42 = vpop.permute.xlu0 %135 }
 0x129   :  { %v138_v43 = vmul.f32 %v136_v42, %v128_v40 }
 0x12b   :  { %140 = vrot.lane.b32.xlu1 %v138_v43, %s888_s19 }
 0x130   :  { %v162_v55 = vpop.permute.xlu0 %161 }
 0x131   :  { %v164_v56 = vmul.f32 %v969_v12, %v162_v55 }
 0x19d   :  { %v141_v46 = vpop.permute.xlu1 %140 }
 0x19e   :  { %v143_v47 = vadd.f32 %v141_v46, %v133_v45 }
 0x1a0   :  { %843 = vtanh.f32 %v143_v47 }
 0x1a6   :  { %v844_v48 = vpop.eup %843 }
 0x1a7   :  { %146 = vrot.lane.b32.xlu2 %v844_v48, %s891_s5 }
 0x201   :  { %v147_v51 = vpop.permute.xlu2 %146 }
 0x202   :  { %v1002_v52 = vmul.f32 %v147_v51, %v128_v40 }
 0x204   :  { %v156_v53 = vpack.c.bf16 %v1002_v52, %v1002_v52 }
 0x206   :  { %166 = vrot.lane.b32.xlu2 %v156_v53, %s888_s19 }
 0x260   :  { %v167_v54 = vpop.permute.xlu2 %166 }
 0x261   :  { %787 = vmatmul.msk.bf16.vlgmr.msra.gmra.mxu3 %vm154_vm9, %v167_v54 }
 0x262   :  { %557 = vmatpush.bf16.msra.mxu3 %v820_v49 }
 0x266   :  { %558 = vmatpush.bf16.msra.mxu3 %v819_v50 }
 0x2e4   :  { %v192_v58 = vpop.f32.mrf.mxu3 }
 0x2e5   :  { %v193_v59 = vadd.f32 %v192_v58, %v164_v56 }
 0x2e7   :  { %v199_v60 = vadd.f32 %v1012_v57, %v193_v59 }
 0x2e9   :  { %v200_v61 = vmul.f32 %v199_v60, %v981_v20 }
 0x2eb   :  { %v788_v62 = vmul.f32 -1.442695, %v200_v61  ;;  %v792_v61 = vld [vmem:[%s1187_s1 + $0x18] sm:$0xff] }
 0x2ec   :  { %v194_v63 = vpop.f32.mrf.mxu3 }
 0x2ed   :  { %845 = vpow2.f32 %v788_v62 }
 0x2f3   :  { %v846_v0 = vpop.eup %845 }
 0x2f4   :  { %v204_v1 = vadd.f32 1.0, %v846_v0 }
 0x2f6   :  { %847 = vrcp.f32 %v204_v1  ;;  %v216_v5 = vand.u32 2147483648, %v204_v1  ;;  %v214_v7 = vand.u32 2147483647, %v204_v1  ;;  %vm210_vm11 = vweird.f32 %v204_v1 }
 0x2f8   :  { %v217_v9 = vor.u32 1.1754944e-38, %v216_v5  ;;  %vm215_vm13 = vcmp.eq.f32.partialorder %v214_v7, 8.507059e+37 }
 0x2fc   :  { %v848_v2 = vpop.eup %847 }
 0x2fd   :  { %v206_v3 = vmul.f32 %v848_v2, %v204_v1  ;;  %vm211_vm10 = vweird.f32 %v848_v2 }
 0x2fe   :  { %vm212_vm12 = vmor %vm210_vm11, %vm211_vm10 }
 0x2ff   :  { %v207_v4 = vsub.f32 1.0, %v206_v3 }
 0x301   :  { %v208_v6 = vmul.f32 %v848_v2, %v207_v4 }
 0x303   :  { %v209_v8 = vadd.f32 %v848_v2, %v208_v6 }
 0x305   :  { %v213_v10 = vsel %vm212_vm12, %v848_v2, %v209_v8 }
 0x306   :  { %v218_v11 = vsel %vm215_vm13, %v217_v9, %v213_v10 }
 0x307   :  { %v220_v13 = vmul.f32 %v218_v11, %v981_v20 }
 0x309   :  { %v221_v14 = vsub.f32 %v220_v13, %v986_v37 }
 0x30b   :  { %224 = vrot.lane.b32.xlu1 %v221_v14, %s891_s5  ;;  %v222_v17 = vmul.f32 %v221_v14, %v143_v47 }
 0x37d   :  { %v225_v15 = vpop.permute.xlu1 %224 }
 0x37e   :  { %v227_v16 = vmul.f32 %v225_v15, %v221_v14 }
 0x380   :  { %229 = vrot.lane.b32.xlu2 %v227_v16, %s888_s19 }
 0x388   :  { %249 = vperm.xlu2 %833, %v789_v25  }
 0x3da   :  { %v230_v18 = vpop.permute.xlu2 %229 }
 0x3db   :  { %v232_v19 = vadd.f32 %v230_v18, %v222_v17 }
 0x3dd   :  { %849 = vtanh.f32 %v232_v19 }
 0x3e2   :  { %v250_v27 = vpop.permute.xlu2 %249 }
 0x3e3   :  { %v850_v21 = vpop.eup %849  ;;  %v252_v28 = vmul.f32 %v969_v12, %v250_v27 }
 0x3e4   :  { %235 = vrot.lane.b32.xlu0 %v850_v21, %s891_s5 }
 0x456   :  { %v236_v22 = vpop.permute.xlu0 %235 }
 0x457   :  { %v1021_v23 = vmul.f32 %v236_v22, %v221_v14 }
 0x459   :  { %v244_v24 = vpack.c.bf16 %v1021_v23, %v1021_v23 }
 0x45b   :  { %254 = vrot.lane.b32.xlu1 %v244_v24, %s888_s19 }
 0x4cd   :  { %v255_v26 = vpop.permute.xlu1 %254 }
 0x4ce   :  { %790 = vmatmul.msk.bf16.vlgmr.msrb.gmra.mxu0 %vm154_vm9, %v255_v26  ;;  %v795_v26 = vld [vmem:[%s1187_s1 + $0x20] sm:$0xff] }
 0x54b   :  { %v268_v29 = vpop.f32.mrf.mxu0 }
 0x54c   :  { %v269_v30 = vadd.f32 %v268_v29, %v252_v28 }
 0x54e   :  { %v272_v31 = vadd.f32 %v1012_v57, %v269_v30 }
 0x550   :  { %v273_v32 = vmul.f32 %v272_v31, %v981_v20 }
 0x552   :  { %v791_v33 = vmul.f32 -1.442695, %v273_v32 }
 0x553   :  { %v270_v34 = vpop.f32.mrf.mxu0 }
 0x554   :  { %851 = vpow2.f32 %v791_v33 }
 0x55a   :  { %v852_v35 = vpop.eup %851 }
 0x55b   :  { %v277_v36 = vadd.f32 1.0, %v852_v35 }
 0x55d   :  { %853 = vrcp.f32 %v277_v36  ;;  %v289_v41 = vand.u32 2147483648, %v277_v36  ;;  %v287_v43 = vand.u32 2147483647, %v277_v36  ;;  %vm283_vm15 = vweird.f32 %v277_v36 }
 0x55f   :  { %v290_v45 = vor.u32 1.1754944e-38, %v289_v41  ;;  %vm288_vm1 = vcmp.eq.f32.partialorder %v287_v43, 8.507059e+37 }
 0x563   :  { %v854_v38 = vpop.eup %853 }
 0x564   :  { %v279_v39 = vmul.f32 %v854_v38, %v277_v36  ;;  %vm284_vm14 = vweird.f32 %v854_v38 }
 0x565   :  { %vm285_vm0 = vmor %vm283_vm15, %vm284_vm14 }
 0x566   :  { %v280_v40 = vsub.f32 1.0, %v279_v39 }
 0x568   :  { %v281_v42 = vmul.f32 %v854_v38, %v280_v40 }
 0x56a   :  { %v282_v44 = vadd.f32 %v854_v38, %v281_v42 }
 0x56c   :  { %v286_v46 = vsel %vm285_vm0, %v854_v38, %v282_v44 }
 0x56d   :  { %v291_v47 = vsel %vm288_vm1, %v290_v45, %v286_v46 }
 0x56e   :  { %v293_v48 = vmul.f32 %v291_v47, %v981_v20 }
 0x570   :  { %v294_v49 = vsub.f32 %v293_v48, %v986_v37 }
 0x572   :  { %297 = vrot.lane.b32.xlu0 %v294_v49, %s891_s5  ;;  %v295_v53 = vmul.f32 %v294_v49, %v232_v19 }
 0x5e4   :  { %v298_v50 = vpop.permute.xlu0 %297 }
 0x5e5   :  { %v300_v51 = vmul.f32 %v298_v50, %v294_v49 }
 0x5e7   :  { %302 = vrot.lane.b32.xlu1 %v300_v51, %s888_s19 }
 0x5ef   :  { %322 = vperm.xlu1 %834, %v792_v61  }
 0x659   :  { %v303_v54 = vpop.permute.xlu1 %302 }
 0x65a   :  { %v305_v55 = vadd.f32 %v303_v54, %v295_v53 }
 0x65c   :  { %855 = vtanh.f32 %v305_v55 }
 0x661   :  { %v323_v63 = vpop.permute.xlu1 %322 }
 0x662   :  { %v856_v56 = vpop.eup %855  ;;  %v325_v0 = vmul.f32 %v969_v12, %v323_v63  ;;  %v798_v63 = vld [vmem:[%s1187_s1 + $0x28] sm:$0xff] }
 0x663   :  { %308 = vrot.lane.b32.xlu2 %v856_v56, %s891_s5 }
 0x6bd   :  { %v309_v58 = vpop.permute.xlu2 %308 }
 0x6be   :  { %v1038_v59 = vmul.f32 %v309_v58, %v294_v49 }
 0x6c0   :  { %v317_v60 = vpack.c.bf16 %v1038_v59, %v1038_v59 }
 0x6c2   :  { %327 = vrot.lane.b32.xlu0 %v317_v60, %s888_s19 }
 0x734   :  { %v328_v62 = vpop.permute.xlu0 %327 }
 0x735   :  { %793 = vmatmul.msk.bf16.vlgmr.msrb.gmra.mxu3 %vm154_vm9, %v328_v62 }
 0x7b8   :  { %v341_v1 = vpop.f32.mrf.mxu3 }
 0x7b9   :  { %v342_v2 = vadd.f32 %v341_v1, %v325_v0 }
 0x7bb   :  { %v345_v3 = vadd.f32 %v1012_v57, %v342_v2 }
 0x7bd   :  { %v346_v4 = vmul.f32 %v345_v3, %v981_v20 }
 0x7bf   :  { %v794_v5 = vmul.f32 -1.442695, %v346_v4 }
 0x7c0   :  { %v343_v6 = vpop.f32.mrf.mxu3 }
 0x7c1   :  { %857 = vpow2.f32 %v794_v5 }
 0x7c7   :  { %v858_v7 = vpop.eup %857 }
 0x7c8   :  { %v350_v8 = vadd.f32 1.0, %v858_v7 }
 0x7ca   :  { %859 = vrcp.f32 %v350_v8  ;;  %v362_v13 = vand.u32 2147483648, %v350_v8  ;;  %v360_v15 = vand.u32 2147483647, %v350_v8  ;;  %vm356_vm3 = vweird.f32 %v350_v8 }
 0x7cc   :  { %v363_v17 = vor.u32 1.1754944e-38, %v362_v13  ;;  %vm361_vm5 = vcmp.eq.f32.partialorder %v360_v15, 8.507059e+37 }
 0x7d0   :  { %v860_v9 = vpop.eup %859 }
 0x7d1   :  { %v352_v10 = vmul.f32 %v860_v9, %v350_v8  ;;  %vm357_vm2 = vweird.f32 %v860_v9 }
 0x7d2   :  { %vm358_vm4 = vmor %vm356_vm3, %vm357_vm2 }
 0x7d3   :  { %v353_v11 = vsub.f32 1.0, %v352_v10 }
 0x7d5   :  { %v354_v14 = vmul.f32 %v860_v9, %v353_v11 }
 0x7d7   :  { %v355_v16 = vadd.f32 %v860_v9, %v354_v14 }
 0x7d9   :  { %v359_v18 = vsel %vm358_vm4, %v860_v9, %v355_v16 }
 0x7da   :  { %v364_v19 = vsel %vm361_vm5, %v363_v17, %v359_v18 }
 0x7db   :  { %v366_v21 = vmul.f32 %v364_v19, %v981_v20 }
 0x7dd   :  { %v367_v22 = vsub.f32 %v366_v21, %v986_v37 }
 0x7df   :  { %370 = vrot.lane.b32.xlu2 %v367_v22, %s891_s5  ;;  %v368_v27 = vmul.f32 %v367_v22, %v305_v55 }
 0x839   :  { %v371_v24 = vpop.permute.xlu2 %370 }
 0x83a   :  { %v373_v25 = vmul.f32 %v371_v24, %v367_v22 }
 0x83c   :  { %375 = vrot.lane.b32.xlu0 %v373_v25, %s888_s19 }
 0x844   :  { %395 = vperm.xlu0 %832, %v795_v26  }
 0x8ae   :  { %v376_v28 = vpop.permute.xlu0 %375 }
 0x8af   :  { %v378_v29 = vadd.f32 %v376_v28, %v368_v27 }
 0x8b1   :  { %861 = vtanh.f32 %v378_v29 }
 0x8b6   :  { %v396_v35 = vpop.permute.xlu0 %395 }
 0x8b7   :  { %v862_v30 = vpop.eup %861  ;;  %v398_v36 = vmul.f32 %v969_v12, %v396_v35 }
 0x8b8   :  { %381 = vrot.lane.b32.xlu1 %v862_v30, %s891_s5 }
 0x92a   :  { %v382_v31 = vpop.permute.xlu1 %381 }
 0x92b   :  { %v1058_v32 = vmul.f32 %v382_v31, %v367_v22 }
 0x92d   :  { %v390_v33 = vpack.c.bf16 %v1058_v32, %v1058_v32 }
 0x92f   :  { %400 = vrot.lane.b32.xlu2 %v390_v33, %s888_s19 }
 0x989   :  { %v401_v34 = vpop.permute.xlu2 %400 }
 0x98a   :  { %796 = vmatmul.msk.bf16.vlgmr.msra.gmra.mxu1 %vm154_vm9, %v401_v34 }
 0xa07   :  { %v414_v38 = vpop.f32.mrf.mxu1 }
 0xa08   :  { %v415_v39 = vadd.f32 %v414_v38, %v398_v36  ;;  %v801_v36 = vld [vmem:[%s1187_s1 + $0x30] sm:$0xff] }
 0xa0a   :  { %v418_v40 = vadd.f32 %v1012_v57, %v415_v39 }
 0xa0c   :  { %v419_v41 = vmul.f32 %v418_v40, %v981_v20 }
 0xa0e   :  { %v797_v42 = vmul.f32 -1.442695, %v419_v41 }
 0xa0f   :  { %v416_v43 = vpop.f32.mrf.mxu1 }
 0xa10   :  { %863 = vpow2.f32 %v797_v42 }
 0xa16   :  { %v864_v44 = vpop.eup %863 }
 0xa17   :  { %v423_v45 = vadd.f32 1.0, %v864_v44 }
 0xa19   :  { %865 = vrcp.f32 %v423_v45  ;;  %v435_v49 = vand.u32 2147483648, %v423_v45  ;;  %v433_v51 = vand.u32 2147483647, %v423_v45  ;;  %vm429_vm7 = vweird.f32 %v423_v45 }
 0xa1b   :  { %v436_v54 = vor.u32 1.1754944e-38, %v435_v49  ;;  %vm434_vm10 = vcmp.eq.f32.partialorder %v433_v51, 8.507059e+37 }
 0xa1f   :  { %v866_v46 = vpop.eup %865 }
 0xa20   :  { %v425_v47 = vmul.f32 %v866_v46, %v423_v45  ;;  %vm430_vm6 = vweird.f32 %v866_v46 }
 0xa21   :  { %vm431_vm8 = vmor %vm429_vm7, %vm430_vm6  ;;  %vm755_vm7 = vcmask 15360  }
 0xa22   :  { %v426_v48 = vsub.f32 1.0, %v425_v47 }
 0xa24   :  { %v427_v50 = vmul.f32 %v866_v46, %v426_v48 }
 0xa26   :  { %v428_v53 = vadd.f32 %v866_v46, %v427_v50 }
 0xa28   :  { %v432_v55 = vsel %vm431_vm8, %v866_v46, %v428_v53 }
 0xa29   :  { %v437_v56 = vsel %vm434_vm10, %v436_v54, %v432_v55 }
 0xa2a   :  { %v439_v58 = vmul.f32 %v437_v56, %v981_v20 }
 0xa2c   :  { %v440_v60 = vsub.f32 %v439_v58, %v986_v37 }
 0xa2e   :  { %443 = vrot.lane.b32.xlu1 %v440_v60, %s891_s5  ;;  %v441_v0 = vmul.f32 %v440_v60, %v378_v29 }
 0xaa0   :  { %v444_v61 = vpop.permute.xlu1 %443 }
 0xaa1   :  { %v446_v62 = vmul.f32 %v444_v61, %v440_v60 }
 0xaa3   :  { %448 = vrot.lane.b32.xlu2 %v446_v62, %s888_s19 }
 0xaab   :  { %468 = vperm.xlu2 %833, %v798_v63  }
 0xafd   :  { %v449_v1 = vpop.permute.xlu2 %448 }
 0xafe   :  { %v451_v2 = vadd.f32 %v449_v1, %v441_v0 }
 0xb00   :  { %867 = vtanh.f32 %v451_v2 }
 0xb05   :  { %v469_v8 = vpop.permute.xlu2 %468 }
 0xb06   :  { %v868_v3 = vpop.eup %867  ;;  %v471_v9 = vmul.f32 %v969_v12, %v469_v8 }
 0xb07   :  { %454 = vrot.lane.b32.xlu0 %v868_v3, %s891_s5 }
 0xb79   :  { %v455_v4 = vpop.permute.xlu0 %454 }
 0xb7a   :  { %v1075_v5 = vmul.f32 %v455_v4, %v440_v60 }
 0xb7c   :  { %v463_v6 = vpack.c.bf16 %v1075_v5, %v1075_v5 }
 0xb7e   :  { %473 = vrot.lane.b32.xlu1 %v463_v6, %s888_s19 }
 0xbf0   :  { %v474_v7 = vpop.permute.xlu1 %473 }
 0xbf1   :  { %799 = vmatmul.msk.bf16.vlgmr.msra.gmra.mxu2 %vm154_vm9, %v474_v7 }
 0xc74   :  { %v487_v10 = vpop.f32.mrf.mxu2 }
 0xc75   :  { %v488_v11 = vadd.f32 %v487_v10, %v471_v9  ;;  %v804_v10 = vld [vmem:[%s1187_s1 + $0x38] sm:$0xff] }
 0xc77   :  { %v491_v13 = vadd.f32 %v1012_v57, %v488_v11 }
 0xc79   :  { %v492_v14 = vmul.f32 %v491_v13, %v981_v20 }
 0xc7b   :  { %v800_v15 = vmul.f32 -1.442695, %v492_v14 }
 0xc7c   :  { %v489_v16 = vpop.f32.mrf.mxu2 }
 0xc7d   :  { %869 = vpow2.f32 %v800_v15 }
 0xc83   :  { %v870_v17 = vpop.eup %869 }
 0xc84   :  { %v496_v18 = vadd.f32 1.0, %v870_v17 }
 0xc86   :  { %871 = vrcp.f32 %v496_v18  ;;  %v508_v24 = vand.u32 2147483648, %v496_v18  ;;  %v506_v26 = vand.u32 2147483647, %v496_v18  ;;  %vm502_vm12 = vweird.f32 %v496_v18 }
 0xc88   :  { %v509_v28 = vor.u32 1.1754944e-38, %v508_v24  ;;  %vm507_vm14 = vcmp.eq.f32.partialorder %v506_v26, 8.507059e+37 }
 0xc8c   :  { %v872_v19 = vpop.eup %871 }
 0xc8d   :  { %v498_v21 = vmul.f32 %v872_v19, %v496_v18  ;;  %vm503_vm11 = vweird.f32 %v872_v19 }
 0xc8e   :  { %vm504_vm13 = vmor %vm502_vm12, %vm503_vm11 }
 0xc8f   :  { %v499_v22 = vsub.f32 1.0, %v498_v21 }
 0xc91   :  { %v500_v25 = vmul.f32 %v872_v19, %v499_v22 }
 0xc93   :  { %v501_v27 = vadd.f32 %v872_v19, %v500_v25 }
 0xc95   :  { %v505_v29 = vsel %vm504_vm13, %v872_v19, %v501_v27 }
 0xc96   :  { %v510_v30 = vsel %vm507_vm14, %v509_v28, %v505_v29 }
 0xc97   :  { %v512_v31 = vmul.f32 %v510_v30, %v981_v20 }
 0xc99   :  { %v513_v33 = vsub.f32 %v512_v31, %v986_v37 }
 0xc9b   :  { %516 = vrot.lane.b32.xlu0 %v513_v33, %s891_s5  ;;  %v514_v38 = vmul.f32 %v513_v33, %v451_v2 }
 0xd0d   :  { %v517_v34 = vpop.permute.xlu0 %516 }
 0xd0e   :  { %v519_v35 = vmul.f32 %v517_v34, %v513_v33 }
 0xd10   :  { %521 = vrot.lane.b32.xlu1 %v519_v35, %s888_s19 }
 0xd18   :  { %541 = vperm.xlu1 %834, %v801_v36  }
 0xd82   :  { %v522_v39 = vpop.permute.xlu1 %521 }
 0xd83   :  { %v524_v40 = vadd.f32 %v522_v39, %v514_v38 }
 0xd85   :  { %873 = vtanh.f32 %v524_v40 }
 0xd8a   :  { %v542_v46 = vpop.permute.xlu1 %541 }
 0xd8b   :  { %v874_v41 = vpop.eup %873  ;;  %v544_v47 = vmul.f32 %v969_v12, %v542_v46 }
 0xd8c   :  { %527 = vrot.lane.b32.xlu2 %v874_v41, %s891_s5 }
 0xde6   :  { %v528_v42 = vpop.permute.xlu2 %527 }
 0xde7   :  { %v1092_v43 = vmul.f32 %v528_v42, %v513_v33 }
 0xde9   :  { %v536_v44 = vpack.c.bf16 %v1092_v43, %v1092_v43 }
 0xdeb   :  { %546 = vrot.lane.b32.xlu0 %v536_v44, %s888_s19 }
 0xe5d   :  { %v547_v45 = vpop.permute.xlu0 %546 }
 0xe5e   :  { %802 = vmatmul.msk.bf16.vlgmr.msra.gmra.mxu3 %vm154_vm9, %v547_v45 }
 0xee1   :  { %v560_v48 = vpop.f32.mrf.mxu3 }
 0xee2   :  { %v561_v49 = vadd.f32 %v560_v48, %v544_v47 }
 0xee4   :  { %v564_v50 = vadd.f32 %v1012_v57, %v561_v49 }
 0xee6   :  { %v565_v51 = vmul.f32 %v564_v50, %v981_v20 }
 0xee8   :  { %v803_v53 = vmul.f32 -1.442695, %v565_v51 }
 0xee9   :  { %v562_v54 = vpop.f32.mrf.mxu3 }
 0xeea   :  { %875 = vpow2.f32 %v803_v53 }
 0xef0   :  { %v876_v55 = vpop.eup %875 }
 0xef1   :  { %v569_v56 = vadd.f32 1.0, %v876_v55 }
 0xef3   :  { %877 = vrcp.f32 %v569_v56  ;;  %v581_v62 = vand.u32 2147483648, %v569_v56  ;;  %v579_v0 = vand.u32 2147483647, %v569_v56  ;;  %vm575_vm0 = vweird.f32 %v569_v56 }
 0xef5   :  { %v582_v2 = vor.u32 1.1754944e-38, %v581_v62  ;;  %vm580_vm2 = vcmp.eq.f32.partialorder %v579_v0, 8.507059e+37 }
 0xef9   :  { %v878_v58 = vpop.eup %877 }
 0xefa   :  { %v571_v60 = vmul.f32 %v878_v58, %v569_v56  ;;  %vm576_vm15 = vweird.f32 %v878_v58 }
 0xefb   :  { %vm577_vm1 = vmor %vm575_vm0, %vm576_vm15 }
 0xefc   :  { %v572_v61 = vsub.f32 1.0, %v571_v60 }
 0xefe   :  { %v573_v63 = vmul.f32 %v878_v58, %v572_v61 }
 0xf00   :  { %v574_v1 = vadd.f32 %v878_v58, %v573_v63 }
 0xf02   :  { %v578_v3 = vsel %vm577_vm1, %v878_v58, %v574_v1 }
 0xf03   :  { %v583_v4 = vsel %vm580_vm2, %v582_v2, %v578_v3 }
 0xf04   :  { %v585_v6 = vmul.f32 %v583_v4, %v981_v20 }
 0xf06   :  { %v586_v7 = vsub.f32 %v585_v6, %v986_v37 }
 0xf08   :  { %589 = vrot.lane.b32.xlu2 %v586_v7, %s891_s5  ;;  %v587_v11 = vmul.f32 %v586_v7, %v524_v40 }
 0xf62   :  { %v590_v8 = vpop.permute.xlu2 %589 }
 0xf63   :  { %v592_v9 = vmul.f32 %v590_v8, %v586_v7 }
 0xf65   :  { %594 = vrot.lane.b32.xlu0 %v592_v9, %s888_s19 }
 0xf6d   :  { %614 = vperm.xlu0 %832, %v804_v10  }
 0xfd7   :  { %v595_v13 = vpop.permute.xlu0 %594 }
 0xfd8   :  { %v597_v14 = vadd.f32 %v595_v13, %v587_v11 }
 0xfda   :  { %879 = vtanh.f32 %v597_v14 }
 0xfdf   :  { %v615_v21 = vpop.permute.xlu0 %614 }
 0xfe0   :  { %v880_v15 = vpop.eup %879  ;;  %v617_v22 = vmul.f32 %v969_v12, %v615_v21 }
 0xfe1   :  { %600 = vrot.lane.b32.xlu1 %v880_v15, %s891_s5 }
0x1053   :  { %v601_v16 = vpop.permute.xlu1 %600 }
0x1054   :  { %v603_v17 = vmul.f32 %v601_v16, %v586_v7 }
0x1056   :  { %v609_v18 = vpack.c.bf16 %v603_v17, %v603_v17 }
0x1058   :  { %619 = vrot.lane.b32.xlu2 %v609_v18, %s888_s19 }
0x10b2   :  { %v620_v19 = vpop.permute.xlu2 %619 }
0x10b3   :  { %805 = vmatmul.msk.bf16.vlgmr.msra.gmra.mxu0 %vm154_vm9, %v620_v19 }
0x1130   :  { %v633_v24 = vpop.f32.mrf.mxu0 }
0x1131   :  { %v634_v25 = vadd.f32 %v633_v24, %v617_v22 }
0x1133   :  { %v637_v26 = vadd.f32 %v1012_v57, %v634_v25 }
0x1135   :  { %v638_v27 = vmul.f32 %v637_v26, %v981_v20 }
0x1137   :  { %v806_v28 = vmul.f32 -1.442695, %v638_v27 }
0x1138   :  { %v635_v29 = vpop.f32.mrf.mxu0 }
0x1139   :  { %881 = vpow2.f32 %v806_v28 }
0x113f   :  { %v882_v30 = vpop.eup %881 }
0x1140   :  { %v642_v31 = vadd.f32 1.0, %v882_v30 }
0x1142   :  { %883 = vrcp.f32 %v642_v31  ;;  %v654_v36 = vand.u32 2147483648, %v642_v31  ;;  %v652_v39 = vand.u32 2147483647, %v642_v31  ;;  %vm648_vm4 = vweird.f32 %v642_v31 }
0x1144   :  { %v655_v40 = vor.u32 1.1754944e-38, %v654_v36  ;;  %vm653_vm6 = vcmp.eq.f32.partialorder %v652_v39, 8.507059e+37 }
0x1148   :  { %v884_v33 = vpop.eup %883 }
0x1149   :  { %v644_v34 = vmul.f32 %v884_v33, %v642_v31  ;;  %vm649_vm3 = vweird.f32 %v884_v33 }
0x114a   :  { %vm650_vm5 = vmor %vm648_vm4, %vm649_vm3 }
0x114b   :  { %v645_v35 = vsub.f32 1.0, %v644_v34 }
0x114d   :  { %v646_v38 = vmul.f32 %v884_v33, %v645_v35 }
0x114f   :  { %v647_v12 = vadd.f32 %v884_v33, %v646_v38 }
0x1151   :  { %v651_v57 = vsel %vm650_vm5, %v884_v33, %v647_v12 }
0x1152   :  { %v656_v41 = vsel %vm653_vm6, %v655_v40, %v651_v57 }
0x1153   :  { %v658_v42 = vmul.f32 %v656_v41, %v981_v20 }
0x1155   :  { %v659_v44 = vsub.f32 %v658_v42, %v986_v37 }
0x1157   :  { %662 = vrot.lane.b32.xlu1 %v659_v44, %s891_s5 }
0x115f   :  { %459 = vrot.lane.b32.xlu1 %v1075_v5, %s888_s19  ;;  %v660_v5 = vmul.f32 %v659_v44, %v597_v14 }
0x1167   :  { %240 = vrot.lane.b32.xlu1 %v1021_v23, %s888_s19  ;;  %v824_v23 = vld [vmem:[%s1194_s8 + $0x8] sm:$0xff] }
0x1168   :  { %825 = vmatpush.bf16.msrb.mxu2 %v824_v23  ;;  %732 = vmatpush.bf16.msrb.mxu1 %v824_v23 }
0x116f   :  { %313 = vrot.lane.b32.xlu1 %v1038_v59, %s888_s19  ;;  %v823_v59 = vld [vmem:[%s1194_s8] sm:$0xff] }
0x1170   :  { %826 = vmatpush.bf16.msrb.mxu2 %v823_v59  ;;  %733 = vmatpush.bf16.msrb.mxu1 %v823_v59 }
0x11c9   :  { %v663_v45 = vpop.permute.xlu1 %662 }
0x11ca   :  { %v665_v46 = vmul.f32 %v663_v45, %v659_v44 }
0x11cc   :  { %667 = vrot.lane.b32.xlu2 %v665_v46, %s888_s19 }
0x11d1   :  { %v460_v47 = vpop.permute.xlu1 %459 }
0x11d2   :  { %462 = vst.msk [vmem:[#allocation2 + $0x20] sm:$0xff] %vm154_vm9, %v460_v47 }
0x11d4   :  { %532 = vrot.lane.b32.xlu2 %v1092_v43, %s888_s19 }
0x11d9   :  { %v241_v20 = vpop.permute.xlu1 %240  ;;  %v686_v51 = vld [vmem:[#allocation2 + $0x20] sm:$0xff] }
0x11da   :  { %243 = vst.msk [vmem:[#allocation2 + $0x8] sm:$0xff] %vm154_vm9, %v241_v20 }
0x11dc   :  { %605 = vrot.lane.b32.xlu2 %v603_v17, %s888_s19 }
0x11e1   :  { %v314_v37 = vpop.permute.xlu1 %313  ;;  %v683_v62 = vld [vmem:[#allocation2 + $0x8] sm:$0xff] }
0x11e2   :  { %316 = vst.msk [vmem:[#allocation2 + $0x10] sm:$0xff] %vm154_vm9, %v314_v37 }
0x11e4   :  { %386 = vrot.lane.b32.xlu2 %v1058_v32, %s888_s19 }
0x11e9   :  { %v684_v3 = vld [vmem:[#allocation2 + $0x10] sm:$0xff] }
0x1226   :  { %v668_v43 = vpop.permute.xlu2 %667 }
0x1227   :  { %v670_v48 = vadd.f32 %v668_v43, %v660_v5 }
0x1229   :  { %885 = vtanh.f32 %v670_v48 }
0x122e   :  { %v533_v49 = vpop.permute.xlu2 %532 }
0x122f   :  { %v886_v50 = vpop.eup %885  ;;  %535 = vst.msk [vmem:[#allocation2 + $0x28] sm:$0xff] %vm154_vm9, %v533_v49 }
0x1230   :  { %673 = vrot.lane.b32.xlu0 %v886_v50, %s891_s5 }
0x1236   :  { %v606_v32 = vpop.permute.xlu2 %605  ;;  %v687_v53 = vld [vmem:[#allocation2 + $0x28] sm:$0xff] }
0x1237   :  { %608 = vst.msk [vmem:[#allocation2 + $0x30] sm:$0xff] %vm154_vm9, %v606_v32  ;;  %v692_v54 = vpack.c.bf16 %v687_v53, %v686_v51 }
0x1238   :  { %151 = vrot.lane.b32.xlu0 %v1002_v52, %s888_s19  ;;  %v838_v52 = vld [vmem:[%s1195_s9] ss:$0 sm:$0xff] }
0x1239   :  { %817 = vmatmul.msk.bf16.vlgmr.msrb.gmra.mxu2 %vm154_vm9, %v692_v54 }
0x123e   :  { %v387_v55 = vpop.permute.xlu2 %386  ;;  %v688_v9 = vld [vmem:[#allocation2 + $0x30] sm:$0xff] }
0x123f   :  { %389 = vst.msk [vmem:[#allocation2 + $0x18] sm:$0xff] %vm154_vm9, %v387_v55 }
0x1246   :  { %v685_v2 = vld [vmem:[#allocation2 + $0x18] sm:$0xff] }
0x1247   :  { %v691_v4 = vpack.c.bf16 %v685_v2, %v684_v3 }
0x12a2   :  { %v674_v56 = vpop.permute.xlu0 %673 }
0x12a3   :  { %v676_v58 = vmul.f32 %v674_v56, %v659_v44 }
0x12a5   :  { %678 = vrot.lane.b32.xlu0 %v676_v58, %s888_s19 }
0x12aa   :  { %v152_v60 = vpop.permute.xlu0 %151 }
0x12ab   :  { %155 = vst.msk [vmem:[#allocation2] sm:$0xff] %vm154_vm9, %v152_v60 }
0x12b2   :  { %v682_v61 = vld [vmem:[#allocation2] sm:$0xff] }
0x12b3   :  { %v690_v63 = vpack.c.bf16 %v683_v62, %v682_v61 }
0x12b5   :  { %815 = vmatmul.msk.bf16.vlgmr.msrb.gmra.mxu1 %vm154_vm9, %v690_v63 }
0x12bc   :  { %v745_v0 = vpop.f32.mrf.mxu2 }
0x12bd   :  { %v746_v1 = vadd.f32 %v838_v52, %v745_v0 }
0x12bf   :  { %760 = vst.msk [vmem:[%s1196_s10 + $0x20] sm:$0xff] %vm755_vm7, %v746_v1 }
0x12c4   :  { %v747_v6 = vpop.f32.mrf.mxu2 }
0x12c5   :  { %v748_v7 = vadd.f32 %v838_v52, %v747_v6  ;;  %816 = vmatmul.msk.bf16.gmra.mxu1 %vm154_vm9, %v691_v4 }
0x12c7   :  { %761 = vst.msk [vmem:[%s1196_s10 + $0x28] sm:$0xff] %vm755_vm7, %v748_v7 }
0x1317   :  { %v679_v8 = vpop.permute.xlu0 %678 }
0x1318   :  { %681 = vst.msk [vmem:[#allocation2 + $0x38] sm:$0xff] %vm154_vm9, %v679_v8 }
0x131f   :  { %v689_v10 = vld [vmem:[#allocation2 + $0x38] sm:$0xff] }
0x1320   :  { %v693_v11 = vpack.c.bf16 %v689_v10, %v688_v9 }
0x1322   :  { %818 = vmatmul.msk.bf16.gmra.mxu2 %vm154_vm9, %v693_v11 }
0x1332   :  { %v735_v13 = vpop.f32.mrf.mxu1 }
0x1333   :  { %v736_v14 = vadd.f32 %v838_v52, %v735_v13 }
0x1335   :  { %756 = vst.msk [vmem:[%s1196_s10] sm:$0xff] %vm755_vm7, %v736_v14 }
0x133a   :  { %v737_v15 = vpop.f32.mrf.mxu1 }
0x133b   :  { %v738_v16 = vadd.f32 %v838_v52, %v737_v15 }
0x133d   :  { %757 = vst.msk [vmem:[%s1196_s10 + $0x8] sm:$0xff] %vm755_vm7, %v738_v16 }
0x1342   :  { %v740_v17 = vpop.f32.mrf.mxu1 }
0x1343   :  { %v741_v18 = vadd.f32 %v838_v52, %v740_v17 }
0x1345   :  { %758 = vst.msk [vmem:[%s1196_s10 + $0x10] sm:$0xff] %vm755_vm7, %v741_v18 }
0x134a   :  { %v742_v19 = vpop.f32.mrf.mxu1 }
0x134b   :  { %v743_v21 = vadd.f32 %v838_v52, %v742_v19 }
0x134d   :  { %759 = vst.msk [vmem:[%s1196_s10 + $0x18] sm:$0xff] %vm755_vm7, %v743_v21 }
0x13a5   :  { %v750_v22 = vpop.f32.mrf.mxu2 }
0x13a6   :  { %v751_v24 = vadd.f32 %v838_v52, %v750_v22 }
0x13a8   :  { %762 = vst.msk [vmem:[%s1196_s10 + $0x30] sm:$0xff] %vm755_vm7, %v751_v24 }
0x13ad   :  { %v752_v25 = vpop.f32.mrf.mxu2 }
0x13ae   :  { %v753_v26 = vadd.f32 %v838_v52, %v752_v25 }
0x13b0   :  { %763 = vst.msk [vmem:[%s1196_s10 + $0x38] sm:$0xff] %vm755_vm7, %v753_v26 }

</bundles_post_ra>
